<compile_context>
chip_gen: v7x
topology: tpu7x:2x2x1
jax: 0.10.0
libtpu: 0.0.40
codegen_flags: <defaults>
</compile_context>

<pallas_src>
import functools

import jax
import jax.numpy as jnp
from jax.experimental import pallas as pl
from jax.experimental.pallas import tpu as pltpu


def _round_up(x, m):
    return (x + m - 1) // m * m


# ----------------------------------------------------------------------------
# Kernel 1: per-frame image embedding (tiled matmul over K) + L2 normalize
# ----------------------------------------------------------------------------
def _embed_kernel(frames_ref, w_ref, out_ref, acc_ref, *, eps=1e-12):
    # frames_ref : (row_tile, k_tile)  bf16 flattened unique frames
    # w_ref      : (k_tile, Dpad)      bf16 synthetic image-encoder projection
    # out_ref    : (row_tile, Dpad)    f32 L2-normalized frame embeddings
    # acc_ref    : (row_tile, Dpad)    f32 scratch accumulator (persists over k)
    k = pl.program_id(1)

    @pl.when(k == 0)
    def _():
        acc_ref[...] = jnp.zeros_like(acc_ref)

    acc_ref[...] += jnp.dot(frames_ref[...], w_ref[...],
                            preferred_element_type=jnp.float32)

    @pl.when(k == pl.num_programs(1) - 1)
    def _():
        emb = acc_ref[...]
        norm2 = jnp.sum(emb * emb, axis=-1, keepdims=True)
        out_ref[...] = emb * jax.lax.rsqrt(jnp.maximum(norm2, eps))


# ----------------------------------------------------------------------------
# Kernel 2: window mean -> video-embedding norm -> rank-1 projection reward
# ----------------------------------------------------------------------------
def _window_reward_kernel(win_ref, target_ref, u_ref, out_ref, *,
                          n_frames, alpha, eps=1e-12):
    # win_ref    : (n_frames, TW, Dpad)  f32 per-frame normalized embeddings
    # target_ref : (1, Dpad)             f32 mean target prompt embedding
    # u_ref      : (1, Dpad)             f32 unit goal-baseline direction
    # out_ref    : (TW, 128)             f32 rewards broadcast across lanes
    acc = win_ref[0]
    for f in range(1, n_frames):
        acc = acc + win_ref[f]
    vid = acc * (1.0 / n_frames)

    norm2 = jnp.sum(vid * vid, axis=-1, keepdims=True)
    vid = vid * jax.lax.rsqrt(jnp.maximum(norm2, eps))

    diff = vid - target_ref[...]                                   # (TW, Dpad)
    d2 = jnp.sum(diff * diff, axis=-1, keepdims=True)              # (TW, 1)
    du = jnp.sum(diff * u_ref[...], axis=-1, keepdims=True)        # (TW, 1)
    # ||diff @ (a*u u^T + (1-a) I)||^2 closed form (no DxD matmul / weight DMA)
    proj_sq = (1.0 - alpha) ** 2 * d2 + alpha * (2.0 - alpha) * du * du
    r = 1.0 - 0.5 * proj_sq                                        # (TW, 1)
    out_ref[...] = jnp.broadcast_to(r, out_ref.shape)              # lane-dense store


# ----------------------------------------------------------------------------
# RewardModel.forward equivalent (glue in plain JAX, hot paths in Pallas)
# ----------------------------------------------------------------------------
def reward_model_forward(x, params, *, episode_length, window_size,
                         window_step, alpha):
    batch_size = x.shape[0]
    n_episodes = batch_size // episode_length
    n_windows = 1 + (episode_length - window_size) // window_step

    if x.shape[1] != 3:                       # (b h w c) -> (b c h w)
        x = jnp.transpose(x, (0, 3, 1, 2))
    c, h, w = x.shape[1:]
    k = c * h * w
    d = params["w_img"].shape[1]

    # ---------------- Stage 1: embed each UNIQUE frame exactly once ---------
    row_tile = 16            # bf16 sublane-packed row tile
    k_tile = 256
    dpad = _round_up(max(d, 128), 128)
    n_rows = batch_size                            # unique frames (step-major)
    npad = _round_up(n_rows, row_tile)
    kpad = _round_up(k, k_tile)

    frames2d = x.reshape(batch_size, k).astype(jnp.bfloat16)
    frames2d = jnp.pad(frames2d, ((0, npad - n_rows), (0, kpad - k)))
    w_img = jnp.pad(params["w_img"].astype(jnp.bfloat16),
                    ((0, kpad - k), (0, dpad - d)))

    emb = pl.pallas_call(
        _embed_kernel,
        out_shape=jax.ShapeDtypeStruct((npad, dpad), jnp.float32),
        grid_spec=pltpu.PrefetchScalarGridSpec(
            num_scalar_prefetch=0,
            grid=(npad // row_tile, kpad // k_tile),
            in_specs=[
                pl.BlockSpec((row_tile, k_tile), lambda i, kk: (i, kk)),
                pl.BlockSpec((k_tile, dpad), lambda i, kk: (kk, 0)),
            ],
            out_specs=pl.BlockSpec((row_tile, dpad), lambda i, kk: (i, 0)),
            scratch_shapes=[pltpu.VMEM((row_tile, dpad), jnp.float32)],
        ),
        compiler_params=pltpu.CompilerParams(
            dimension_semantics=("parallel", "arbitrary"),
            vmem_limit_bytes=32 * 1024 * 1024),
    )(frames2d, w_img)

    # -------- Stage 2: window gather (D-wide rows, cheap glue) + reward -----
    nwe = n_windows * n_episodes
    tw = 8
    nwe_pad = _round_up(nwe, tw)

    emb3 = emb[:n_rows].reshape(episode_length, n_episodes, dpad)
    step_idx = (jnp.arange(window_size)[:, None]
                + window_step * jnp.arange(n_windows)[None, :])    # (ws, nw)
    win = emb3[step_idx].reshape(window_size, nwe, dpad)           # unfold gather
    win = jnp.pad(win, ((0, 0), (0, nwe_pad - nwe), (0, 0)))

    target = jnp.pad(params["target"].astype(jnp.float32), ((0, 0), (0, dpad - d)))
    u = jnp.pad(params["u"].astype(jnp.float32), ((0, 0), (0, dpad - d)))

    kernel2 = functools.partial(_window_reward_kernel,
                                n_frames=window_size, alpha=float(alpha))
    out = pl.pallas_call(
        kernel2,
        out_shape=jax.ShapeDtypeStruct((nwe_pad, 128), jnp.float32),
        grid_spec=pltpu.PrefetchScalarGridSpec(
            num_scalar_prefetch=0,
            grid=(nwe_pad // tw,),
            in_specs=[
                pl.BlockSpec((window_size, tw, dpad), lambda i: (0, i, 0)),
                pl.BlockSpec((1, dpad), lambda i: (0, 0)),
                pl.BlockSpec((1, dpad), lambda i: (0, 0)),
            ],
            out_specs=pl.BlockSpec((tw, 128), lambda i: (i, 0)),
        ),
        compiler_params=pltpu.CompilerParams(
            dimension_semantics=("parallel",)),
    )(win, target, u)

    window_rewards = out[:nwe, 0]

    # Final scatter matches the torch module verbatim:
    #   indices = arange(n_windows*n_episodes) * window_step + window_size - 1
    rewards = jnp.zeros((batch_size,), jnp.float32)
    indices = jnp.arange(nwe) * window_step + window_size - 1
    rewards = rewards.at[indices].set(window_rewards)
    return rewards


# ----------------------------------------------------------------------------
# Pure-JAX reference (same math, explicit DxD projection to validate the
# rank-1 closed form; same bf16 cast on the matmul operands as the kernel)
# ----------------------------------------------------------------------------
def _reference_forward(x, params, *, episode_length, window_size, window_step):
    batch_size = x.shape[0]
    n_episodes = batch_size // episode_length
    n_windows = 1 + (episode_length - window_size) // window_step
    if x.shape[1] != 3:
        x = jnp.transpose(x, (0, 3, 1, 2))
    c, h, w = x.shape[1:]
    k = c * h * w

    frames = x.reshape(batch_size, k).astype(jnp.bfloat16)
    w_img = params["w_img"].astype(jnp.bfloat16)
    emb = jnp.dot(frames, w_img, preferred_element_type=jnp.float32)
    emb = emb * jax.lax.rsqrt(
        jnp.maximum(jnp.sum(emb * emb, axis=-1, keepdims=True), 1e-12))
    emb = emb.reshape(episode_length, n_episodes, -1)

    step_idx = (jnp.arange(window_size)[:, None]
                + window_step * jnp.arange(n_windows)[None, :])
    win = emb[step_idx].reshape(window_size, n_windows * n_episodes, -1)
    vid = win.mean(0)
    vid = vid * jax.lax.rsqrt(
        jnp.maximum(jnp.sum(vid * vid, axis=-1, keepdims=True), 1e-12))

    y = (vid - params["target"]) @ params["proj"]
    wr = 1.0 - 0.5 * jnp.sum(y * y, axis=-1)

    rewards = jnp.zeros((batch_size,), jnp.float32)
    idx = jnp.arange(n_windows * n_episodes) * window_step + window_size - 1
    return rewards.at[idx].set(wr)


# ----------------------------------------------------------------------------
# Deterministic synthetic parameter construction (CLIP stand-in)
# ----------------------------------------------------------------------------
def make_params(key, k, d, alpha=0.5):
    k1, k2, k3 = jax.random.split(key, 3)
    w_img = jax.random.normal(k1, (k, d), jnp.float32) / jnp.sqrt(k)
    # synthetic "text prompt" embeddings (stand-in for CLIP encode_text)
    t_emb = jax.random.normal(k2, (3, d), jnp.float32)
    b_emb = jax.random.normal(k3, (2, d), jnp.float32)
    t_emb = t_emb / jnp.linalg.norm(t_emb, axis=-1, keepdims=True)
    b_emb = b_emb / jnp.linalg.norm(b_emb, axis=-1, keepdims=True)
    target = t_emb.mean(0, keepdims=True)
    baseline = b_emb.mean(0, keepdims=True)
    direction = target - baseline
    u = direction / jnp.linalg.norm(direction)
    proj = alpha * (u.T @ u) + (1.0 - alpha) * jnp.eye(d, dtype=jnp.float32)
    return {"w_img": w_img, "target": target, "u": u, "proj": proj}


if __name__ == "__main__":
    # episode_length=8, n_episodes=4 -> batch=32, C=3, H=W=16,
    # window_size=4, window_step=2 -> n_windows=3, embed D=32 (padded to 128).
    episode_length, window_size, window_step = 8, 4, 2
    n_episodes, C, H, W, D = 4, 3, 16, 16, 32
    alpha = 0.5
    B = episode_length * n_episodes
    K = C * H * W

    key = jax.random.PRNGKey(0)
    kx, kp = jax.random.split(key)
    x = jax.random.uniform(kx, (B, C, H, W), jnp.float32)   # NCHW frames
    params = make_params(kp, K, D, alpha=alpha)

    fwd = jax.jit(functools.partial(
        reward_model_forward,
        episode_length=episode_length, window_size=window_size,
        window_step=window_step, alpha=alpha))
    rewards = jax.block_until_ready(fwd(x, params))

    ref = jax.block_until_ready(_reference_forward(
        x, params,
        episode_length=episode_length, window_size=window_size,
        window_step=window_step))

    assert rewards.shape == (B,)
    assert bool(jnp.all(jnp.isfinite(rewards)))
    assert bool(jnp.allclose(rewards, ref, atol=1e-3, rtol=1e-3))
    print("KERNEL_OK")
</pallas_src>

<mosaic_0001>
module attributes {stable_mosaic.version = 11 : i64} {
  func.func @_embed_kernel(%arg0: i32, %arg1: i32, %arg2: memref<16x256xbf16, #tpu.memory_space<vmem>>, %arg3: memref<256x128xbf16, #tpu.memory_space<vmem>>, %arg4: memref<16x128xf32, #tpu.memory_space<vmem>>, %arg5: memref<16x128xf32, #tpu.memory_space<vmem>>) attributes {dimension_semantics = [#tpu.dimension_semantics<parallel>, #tpu.dimension_semantics<arbitrary>], iteration_bounds = array<i64: 2, 3>, scalar_prefetch = 0 : i64, scratch_operands = 1 : i64, tpu.core_type = #tpu.core_type<tc>, window_params = [{transform_indices = @transform_0, window_bounds = array<i64: 16, 256>}, {transform_indices = @transform_1, window_bounds = array<i64: 256, 128>}, {transform_indices = @transform_2, window_bounds = array<i64: 16, 128>}]} {
    %c0_i32 = arith.constant 0 : i32
    %0 = arith.cmpi eq, %arg1, %c0_i32 : i32
    %1 = arith.extui %0 : i1 to i32
    %c0_i32_0 = arith.constant 0 : i32
    %2 = arith.cmpi ne, %1, %c0_i32_0 : i32
    scf.if %2 {
      %cst_9 = arith.constant 0.000000e+00 : f32
      %12 = vector.broadcast %cst_9 : f32 to vector<16x128xf32>
      %c0_10 = arith.constant 0 : index
      %c0_11 = arith.constant 0 : index
      %13 = vector.load %arg5[%c0_10, %c0_11] : memref<16x128xf32, #tpu.memory_space<vmem>>, vector<16x128xf32>
      tpu.vector_store %arg5[%c0_10, %c0_11], %12 {strides = array<i32>} : memref<16x128xf32, #tpu.memory_space<vmem>>, vector<16x128xf32>,
    } else {
    }
    %c0 = arith.constant 0 : index
    %c0_1 = arith.constant 0 : index
    %3 = vector.load %arg5[%c0, %c0_1] : memref<16x128xf32, #tpu.memory_space<vmem>>, vector<16x128xf32>
    %c0_2 = arith.constant 0 : index
    %c0_3 = arith.constant 0 : index
    %4 = vector.load %arg2[%c0_2, %c0_3] : memref<16x256xbf16, #tpu.memory_space<vmem>>, vector<16x256xbf16>
    %c0_4 = arith.constant 0 : index
    %c0_5 = arith.constant 0 : index
    %5 = vector.load %arg3[%c0_4, %c0_5] : memref<256x128xbf16, #tpu.memory_space<vmem>>, vector<256x128xbf16>
    %cst = arith.constant dense<0.000000e+00> : vector<16x128xf32>
    %6 = tpu.matmul %4, %5, %cst {dimension_numbers = #tpu.dot_dimension_numbers<[1], [0], [0], [1], [0, 0, 1, 1], [], []>} : vector<16x256xbf16>, vector<256x128xbf16>, vector<16x128xf32> -> vector<16x128xf32>
    %7 = arith.addf %3, %6 : vector<16x128xf32>
    %c0_6 = arith.constant 0 : index
    %c0_7 = arith.constant 0 : index
    %8 = vector.load %arg5[%c0_6, %c0_7] : memref<16x128xf32, #tpu.memory_space<vmem>>, vector<16x128xf32>
    tpu.vector_store %arg5[%c0_6, %c0_7], %7 {strides = array<i32>} : memref<16x128xf32, #tpu.memory_space<vmem>>, vector<16x128xf32>,
    %c2_i32 = arith.constant 2 : i32
    %9 = arith.cmpi eq, %arg1, %c2_i32 : i32
    %10 = arith.extui %9 : i1 to i32
    %c0_i32_8 = arith.constant 0 : i32
    %11 = arith.cmpi ne, %10, %c0_i32_8 : i32
    scf.if %11 {
      %c0_9 = arith.constant 0 : index
      %c0_10 = arith.constant 0 : index
      %12 = vector.load %arg5[%c0_9, %c0_10] : memref<16x128xf32, #tpu.memory_space<vmem>>, vector<16x128xf32>
      %13 = arith.mulf %12, %12 : vector<16x128xf32>
      %cst_11 = arith.constant dense<0.000000e+00> : vector<16xf32>
      %14 = vector.multi_reduction <add>, %13, %cst_11 [1] : vector<16x128xf32> to vector<16xf32>
      %15 = vector.shape_cast %14 : vector<16xf32> to vector<16x1xf32>
      %cst_12 = arith.constant 9.99999996E-13 : f32
      %16 = vector.broadcast %cst_12 : f32 to vector<16x1xf32>
      %17 = arith.maximumf %15, %16 : vector<16x1xf32>
      %18 = math.rsqrt %17 : vector<16x1xf32>
      %19 = vector.broadcast %18 : vector<16x1xf32> to vector<16x128xf32>
      %20 = arith.mulf %12, %19 : vector<16x128xf32>
      %c0_13 = arith.constant 0 : index
      %c0_14 = arith.constant 0 : index
      %21 = vector.load %arg4[%c0_13, %c0_14] : memref<16x128xf32, #tpu.memory_space<vmem>>, vector<16x128xf32>
      tpu.vector_store %arg4[%c0_13, %c0_14], %20 {strides = array<i32>} : memref<16x128xf32, #tpu.memory_space<vmem>>, vector<16x128xf32>,
    } else {
    }
    return
  }
  func.func @transform_0(%arg0: i32, %arg1: i32) -> (i32, i32) {
    %c0_i32 = arith.constant 0 : i32
    return %arg0, %arg1 : i32, i32
  }
  func.func @transform_1(%arg0: i32, %arg1: i32) -> (i32, i32) {
    %c0_i32 = arith.constant 0 : i32
    %c0_i32_0 = arith.constant 0 : i32
    return %arg1, %c0_i32 : i32, i32
  }
  func.func @transform_2(%arg0: i32, %arg1: i32) -> (i32, i32) {
    %c0_i32 = arith.constant 0 : i32
    %c0_i32_0 = arith.constant 0 : i32
    return %arg0, %c0_i32 : i32, i32
  }
}

module attributes {stable_mosaic.version = 11 : i64} {
  func.func @_window_reward_kernel(%arg0: i32, %arg1: memref<4x8x128xf32, #tpu.memory_space<vmem>>, %arg2: memref<1x128xf32, #tpu.memory_space<vmem>>, %arg3: memref<1x128xf32, #tpu.memory_space<vmem>>, %arg4: memref<8x128xf32, #tpu.memory_space<vmem>>) attributes {dimension_semantics = [#tpu.dimension_semantics<parallel>], iteration_bounds = array<i64: 2>, scalar_prefetch = 0 : i64, scratch_operands = 0 : i64, tpu.core_type = #tpu.core_type<tc>, window_params = [{transform_indices = @transform_0, window_bounds = array<i64: 4, 8, 128>}, {pipeline_mode = #tpu.pipeline_mode<synchronous>, transform_indices = @transform_1, window_bounds = array<i64: 1, 128>}, {pipeline_mode = #tpu.pipeline_mode<synchronous>, transform_indices = @transform_2, window_bounds = array<i64: 1, 128>}, {transform_indices = @transform_3, window_bounds = array<i64: 8, 128>}]} {
    %c0 = arith.constant 0 : index
    %c0_0 = arith.constant 0 : index
    %c0_1 = arith.constant 0 : index
    %0 = vector.load %arg1[%c0, %c0_0, %c0_1] : memref<4x8x128xf32, #tpu.memory_space<vmem>>, vector<1x8x128xf32>
    %1 = vector.shape_cast %0 : vector<1x8x128xf32> to vector<8x128xf32>
    %c1 = arith.constant 1 : index
    %c0_2 = arith.constant 0 : index
    %c0_3 = arith.constant 0 : index
    %2 = vector.load %arg1[%c1, %c0_2, %c0_3] : memref<4x8x128xf32, #tpu.memory_space<vmem>>, vector<1x8x128xf32>
    %3 = vector.shape_cast %2 : vector<1x8x128xf32> to vector<8x128xf32>
    %4 = arith.addf %1, %3 : vector<8x128xf32>
    %c2 = arith.constant 2 : index
    %c0_4 = arith.constant 0 : index
    %c0_5 = arith.constant 0 : index
    %5 = vector.load %arg1[%c2, %c0_4, %c0_5] : memref<4x8x128xf32, #tpu.memory_space<vmem>>, vector<1x8x128xf32>
    %6 = vector.shape_cast %5 : vector<1x8x128xf32> to vector<8x128xf32>
    %7 = arith.addf %4, %6 : vector<8x128xf32>
    %c3 = arith.constant 3 : index
    %c0_6 = arith.constant 0 : index
    %c0_7 = arith.constant 0 : index
    %8 = vector.load %arg1[%c3, %c0_6, %c0_7] : memref<4x8x128xf32, #tpu.memory_space<vmem>>, vector<1x8x128xf32>
    %9 = vector.shape_cast %8 : vector<1x8x128xf32> to vector<8x128xf32>
    %10 = arith.addf %7, %9 : vector<8x128xf32>
    %cst = arith.constant 2.500000e-01 : f32
    %11 = vector.broadcast %cst : f32 to vector<8x128xf32>
    %12 = arith.mulf %10, %11 : vector<8x128xf32>
    %13 = arith.mulf %12, %12 : vector<8x128xf32>
    %cst_8 = arith.constant dense<0.000000e+00> : vector<8xf32>
    %14 = vector.multi_reduction <add>, %13, %cst_8 [1] : vector<8x128xf32> to vector<8xf32>
    %15 = vector.shape_cast %14 : vector<8xf32> to vector<8x1xf32>
    %cst_9 = arith.constant 9.99999996E-13 : f32
    %16 = vector.broadcast %cst_9 : f32 to vector<8x1xf32>
    %17 = arith.maximumf %15, %16 : vector<8x1xf32>
    %18 = math.rsqrt %17 : vector<8x1xf32>
    %19 = vector.broadcast %18 : vector<8x1xf32> to vector<8x128xf32>
    %20 = arith.mulf %12, %19 : vector<8x128xf32>
    %c0_10 = arith.constant 0 : index
    %c0_11 = arith.constant 0 : index
    %21 = vector.load %arg2[%c0_10, %c0_11] : memref<1x128xf32, #tpu.memory_space<vmem>>, vector<1x128xf32>
    %22 = vector.broadcast %21 : vector<1x128xf32> to vector<8x128xf32>
    %23 = arith.subf %20, %22 : vector<8x128xf32>
    %24 = arith.mulf %23, %23 : vector<8x128xf32>
    %cst_12 = arith.constant dense<0.000000e+00> : vector<8xf32>
    %25 = vector.multi_reduction <add>, %24, %cst_12 [1] : vector<8x128xf32> to vector<8xf32>
    %26 = vector.shape_cast %25 : vector<8xf32> to vector<8x1xf32>
    %c0_13 = arith.constant 0 : index
    %c0_14 = arith.constant 0 : index
    %27 = vector.load %arg3[%c0_13, %c0_14] : memref<1x128xf32, #tpu.memory_space<vmem>>, vector<1x128xf32>
    %28 = vector.broadcast %27 : vector<1x128xf32> to vector<8x128xf32>
    %29 = arith.mulf %23, %28 : vector<8x128xf32>
    %cst_15 = arith.constant dense<0.000000e+00> : vector<8xf32>
    %30 = vector.multi_reduction <add>, %29, %cst_15 [1] : vector<8x128xf32> to vector<8xf32>
    %31 = vector.shape_cast %30 : vector<8xf32> to vector<8x1xf32>
    %cst_16 = arith.constant 2.500000e-01 : f32
    %32 = vector.broadcast %cst_16 : f32 to vector<8x1xf32>
    %33 = arith.mulf %32, %26 : vector<8x1xf32>
    %cst_17 = arith.constant 7.500000e-01 : f32
    %34 = vector.broadcast %cst_17 : f32 to vector<8x1xf32>
    %35 = arith.mulf %34, %31 : vector<8x1xf32>
    %36 = arith.mulf %35, %31 : vector<8x1xf32>
    %37 = arith.addf %33, %36 : vector<8x1xf32>
    %cst_18 = arith.constant 5.000000e-01 : f32
    %38 = vector.broadcast %cst_18 : f32 to vector<8x1xf32>
    %39 = arith.mulf %38, %37 : vector<8x1xf32>
    %cst_19 = arith.constant 1.000000e+00 : f32
    %40 = vector.broadcast %cst_19 : f32 to vector<8x1xf32>
    %41 = arith.subf %40, %39 : vector<8x1xf32>
    %42 = vector.shape_cast %41 : vector<8x1xf32> to vector<8x1xf32>
    %43 = vector.broadcast %42 : vector<8x1xf32> to vector<8x128xf32>
    %c0_20 = arith.constant 0 : index
    %c0_21 = arith.constant 0 : index
    %44 = vector.load %arg4[%c0_20, %c0_21] : memref<8x128xf32, #tpu.memory_space<vmem>>, vector<8x128xf32>
    tpu.vector_store %arg4[%c0_20, %c0_21], %43 {strides = array<i32>} : memref<8x128xf32, #tpu.memory_space<vmem>>, vector<8x128xf32>,
    return
  }
  func.func @transform_0(%arg0: i32) -> (i32, i32, i32) {
    %c0_i32 = arith.constant 0 : i32
    %c0_i32_0 = arith.constant 0 : i32
    %c0_i32_1 = arith.constant 0 : i32
    return %c0_i32, %arg0, %c0_i32_0 : i32, i32, i32
  }
  func.func @transform_1(%arg0: i32) -> (i32, i32) {
    %c0_i32 = arith.constant 0 : i32
    %c0_i32_0 = arith.constant 0 : i32
    %c0_i32_1 = arith.constant 0 : i32
    return %c0_i32, %c0_i32_0 : i32, i32
  }
  func.func @transform_2(%arg0: i32) -> (i32, i32) {
    %c0_i32 = arith.constant 0 : i32
    %c0_i32_0 = arith.constant 0 : i32
    %c0_i32_1 = arith.constant 0 : i32
    return %c0_i32, %c0_i32_0 : i32, i32
  }
  func.func @transform_3(%arg0: i32) -> (i32, i32) {
    %c0_i32 = arith.constant 0 : i32
    %c0_i32_0 = arith.constant 0 : i32
    return %arg0, %c0_i32 : i32, i32
  }
}

</mosaic_0001>

<bundles_post_ra>
// kernel: reward_model_forward.3
= control target key start
LH: loop header
LB: loop body
LE: loop exit
PB: predicated region body
PF: predicated region fallthrough
CT: control target
= control target key end

     0   :  { %s405_s12 = smov 0   ;;  %s407_s13 = smov 0   ;;  %s465_s0 = inlined_call_operand.vmem [shape: f32[4,16,128], index: 0, kind: input, shape index: {}]   ;;  %s466_s1 = inlined_call_operand.vmem [shape: f32[1,128], index: 1, kind: input, shape index: {}]   ;;  %s467_s2 = inlined_call_operand.vmem [shape: f32[1,128], index: 2, kind: input, shape index: {}]   ;;  %s468_s3 = inlined_call_operand.vmem [shape: f32[16,128], index: 3, kind: output, shape index: {}]  }
   0x1   :  { %s409_s14 = smov 0  }
   0x2 LB: > { %s319_s15 = sadd.s32 4294967295, %s383_s14   ;;  %s422_s16 = sadd.s32 1, %s383_s14   ;;  %s383_s14 = sphi %s409_s14, %s471_s14   ;;  %s379_s13 = sphi %s407_s13, %s470_s13   ;;  %s375_s12 = sphi %s405_s12, %s469_s12  }
   0x3   : > { %s17_s17 = ssub.s32 %s383_s14, %s422_s16  ;;  %s20_s18 = sadd.s32 1, %s379_s13 }
   0x4   : > { %p18_p0 = scmp.eq.s32.totalorder %s17_s17, 0  ;;  %p27_p1 = scmp.ne.s32.totalorder %s379_s13, %s375_s12 }
   0x5   : > { %p28_p2 = scmp.eq.s32.totalorder %s383_s14, 0  ;;  %p322_p4 = scmp.ge.s32.totalorder %s383_s14, 2 }
   0x6   : > { %s431_s19 = scalar_select %p18_p0, %s379_s13, %s20_s18  }
   0x7   : > { %p29_p3 = por %p28_p2, %p27_p1  ;;  %127 = sbr.rel (%p322_p4) target bundleno = 21 (0x15), region = 24 }
   0xe   : > { %130 = sbr.rel (!%p29_p3) target bundleno = 21 (0x15), region = 28  ;;  %s132_s20 = sand.u32 (%p29_p3), 1, %s379_s13  }
   0xf   : > { %s324_s21 = sshll.u32 (%p29_p3), %s383_s14, 3  ;;  %s323_s22 = sshll.u32 (%p29_p3), %s132_s20, 5 }
  0x10   : > { %s136_s25 = scalar_lea.vmem (%p29_p3), %s465_s0, %s324_s21  ;;  %s134_s26 = scalar_lea.vmem (%p29_p3), [#allocation2], %s323_s22 }
  0x11   : > { %v170_v0 = vld [vmem:[%s136_s25] sm:$0xff] (%p29_p3)  ;;  %v172_v1 = vld [vmem:[%s136_s25 + $0x10] sm:$0xff] (%p29_p3) }
  0x12   : > { %v174_v2 = vld [vmem:[%s136_s25 + $0x20] sm:$0xff] (%p29_p3)  ;;  %171 = vst [vmem:[%s134_s26] sm:$0xff] (%p29_p3), %v170_v0  ;;  %173 = vst [vmem:[%s134_s26 + $0x8] sm:$0xff] (%p29_p3), %v172_v1  ;;  %v176_v3 = vld [vmem:[%s136_s25 + $0x30] sm:$0xff] (%p29_p3) }
  0x13   : > { %175 = vst [vmem:[%s134_s26 + $0x10] sm:$0xff] (%p29_p3), %v174_v2  ;;  %177 = vst [vmem:[%s134_s26 + $0x18] sm:$0xff] (%p29_p3), %v176_v3 }
  0x15 PF: > { %p325_p5 = scmp.ge.s32.totalorder %s383_s14, 1  ;;  %p182_p6 = scmp.lt.s32.totalorder %s383_s14, 3 }
  0x17   : > { %p183_p7 = pnand %p325_p5, %p182_p6 }
  0x18   : > { %s189_s27 = sand.u32 (!%p183_p7), 1, %s375_s12   ;;  %v331_v16 = vld [vmem:[%s466_s1] ss:$0 sm:$0xff] (!%p183_p7)  ;;  %p211_p8 = scmp.lt.s32.totalorder (!%p183_p7), %s319_s15, 1 }
  0x19   : > { %186 = sbr.rel (%p183_p7) target bundleno = 352 (0x160), region = 66  ;;  %s326_s28 = sshll.u32 (!%p183_p7), %s189_s27, 5  ;;  %v332_v18 = vld [vmem:[%s467_s2] ss:$0 sm:$0xff] (!%p183_p7) }
  0x1a   : > { %s191_s29 = scalar_lea.vmem (!%p183_p7), [#allocation2], %s326_s28 }
  0x1b   : > { %v215_v4 = vld [vmem:[%s191_s29] sm:$0xff] (!%p183_p7)  ;;  %v328_v5 = vld [vmem:[%s191_s29 + $0x8] sm:$0xff] (!%p183_p7)  ;;  %v329_v6 = vld [vmem:[%s191_s29 + $0x10] sm:$0xff] (!%p183_p7) }
  0x1c   : > { %v218_v7 = vadd.f32 (!%p183_p7), %v328_v5, %v215_v4  ;;  %v330_v8 = vld [vmem:[%s191_s29 + $0x18] sm:$0xff] (!%p183_p7) }
  0x1e   : > { %v221_v9 = vadd.f32 (!%p183_p7), %v329_v6, %v218_v7 }
  0x20   : > { %v224_v10 = vadd.f32 %v330_v8, %v221_v9  ;;  %s473_s15 = smov (!%p211_p8, %s319_s15), 1 }
  0x21   : > { %s327_s7 = sshll.u32 %s473_s15, 3 }
  0x22   : > { %v225_v11 = vmul.f32 0.25, %v224_v10  ;;  %s214_s10 = scalar_lea.vmem %s468_s3, %s327_s7 }
  0x24   : > { %v226_v12 = vmul.f32 %v225_v11, %v225_v11 }
  0x26   : > { %227 = vadd.xlane.f32.xlu0 %v226_v12 }
  0xb3   : > { %v228_v13 = vpop.xlane.xlu0 %227 }
  0xb4   : > { %v229_v14 = vmax.f32 %v228_v13, 1e-12 }
  0xb6   : > { %359 = vrsqrt.f32 %v229_v14 }
  0xc0   : > { %v360_v15 = vpop.eup %359 }
  0xc1   : > { %v231_v17 = vmul.f32 %v360_v15, %v225_v11 }
  0xc3   : > { %v239_v19 = vsub.f32 %v231_v17, %v331_v16 }
  0xc5   : > { %v250_v20 = vmul.f32 %v332_v18, %v239_v19  ;;  %v240_v21 = vmul.f32 %v239_v19, %v239_v19 }
  0xc7   : > { %251 = vadd.xlane.f32.xlu0 %v250_v20  ;;  %241 = vadd.xlane.f32.xlu1 %v240_v21 }
 0x154   : > { %v252_v22 = vpop.xlane.xlu0 %251  ;;  %v242_v23 = vpop.xlane.xlu1 %241 }
 0x155   : > { %v254_v24 = vmul.f32 0.75, %v252_v22  ;;  %v253_v26 = vmul.f32 0.25, %v242_v23 }
 0x157   : > { %v255_v25 = vmul.f32 %v254_v24, %v252_v22 }
 0x159   : > { %v256_v27 = vadd.f32 %v255_v25, %v253_v26 }
 0x15b   : > { %v257_v28 = vmul.f32 0.5, %v256_v27 }
 0x15d   : > { %v258_v29 = vsub.f32 1.0, %v257_v28 }
 0x15f   : > { %259 = vst [vmem:[%s214_s10] sm:$0xff] %v258_v29 }
 0x160 PF: > { %p10_p9 = scmp.ge.s32.totalorder %s422_s16, 4   ;;  %s469_s12 = smov %s379_s13 }
 0x161   : > { %s470_s13 = smov %s431_s19  ;;  %s471_s14 = smov %s422_s16 }
 0x162   :  { %12 = sbr.rel (!%p10_p9) target bundleno = 2 (0x2), region = 108 }

// kernel: reward_model_forward.2
= control target key start
LH: loop header
LB: loop body
LE: loop exit
PB: predicated region body
PF: predicated region fallthrough
CT: control target
= control target key end

     0   :  { %s740_s9 = smov 0   ;;  %s742_s10 = smov 0   ;;  %s863_s0 = inlined_call_operand.vmem [shape: bf16[32,768], index: 0, kind: input, shape index: {}]   ;;  %s864_s1 = inlined_call_operand.vmem [shape: bf16[768,128], index: 1, kind: input, shape index: {}]   ;;  %s865_s2 = inlined_call_operand.vmem [shape: f32[32,128], index: 2, kind: output, shape index: {}]  }
   0x1   :  { %s744_s11 = smov 0   ;;  %s746_s12 = smov 0  }
   0x2   :  { %s748_s13 = smov 0   ;;  %s750_s14 = smov 0  }
   0x3   :  { %s752_s15 = smov 0  }
   0x4 LB: > { %s21_s16 = sadd.s32 1, %s714_s13  ;;  %s24_s17 = sadd.s32 1, %s718_s14  ;;  %s722_s15 = sphi %s752_s15, %s12_s15   ;;  %s718_s14 = sphi %s750_s14, %s871_s14   ;;  %s714_s13 = sphi %s748_s13, %s870_s13   ;;  %s710_s12 = sphi %s746_s12, %s869_s12   ;;  %s706_s11 = sphi %s744_s11, %s868_s11   ;;  %s702_s10 = sphi %s742_s10, %s867_s10   ;;  %s698_s9 = sphi %s740_s9, %s866_s9  }
   0x5   : > { %p22_p0 = scmp.ge.s32.totalorder %s21_s16, 3  ;;  %p40_p1 = scmp.ne.s32.totalorder %s702_s10, %s698_s9 }
   0x6   : > { %p41_p2 = scmp.eq.s32.totalorder %s722_s15, 0  ;;  %s33_s21 = sadd.s32 1, %s702_s10 }
   0x7   : > { %s873_s16 = smov (%p22_p0, %s21_s16), 0  ;;  %s875_s17 = smov (!%p22_p0, %s24_s17), %s718_s14 }
   0x8   : > { %p42_p3 = por %p41_p2, %p40_p1  ;;  %p26_p4 = scmp.ge.s32.totalorder %s875_s17, 2 }
   0x9   : > { %s29_s18 = ssub.s32 %s714_s13, %s873_s16  ;;  %p531_p6 = scmp.ge.s32.totalorder %s722_s15, 6 }
   0xa   : > { %s877_s17 = smov (%p26_p4, %s875_s17), 0 }
   0xb   : > { %s28_s19 = ssub.s32 %s718_s14, %s877_s17  ;;  %118 = sbr.rel (%p531_p6) target bundleno = 27 (0x1b), region = 16 }
   0xc   : > { %s30_s20 = sor.u32 %s29_s18, %s28_s19 }
   0xd   : > { %p31_p5 = scmp.eq.s32.totalorder %s30_s20, 0 }
   0xf   : > { %s791_s22 = scalar_select %p31_p5, %s702_s10, %s33_s21  }
  0x12   : > { %121 = sbr.rel (!%p42_p3) target bundleno = 27 (0x1b), region = 20  ;;  %s123_s23 = sand.u32 (%p42_p3), 1, %s702_s10  }
  0x13   : > { %s534_s24 = sshll.u32 (%p42_p3), %s714_s13, 1  ;;  %s532_s25 = sshll.u32 (%p42_p3), %s123_s23, 4 }
  0x14   : > { %s587_s26 = smul.u32 (%p42_p3), 12, %s718_s14  ;;  %s125_s4 = scalar_lea.vmem (%p42_p3), [#allocation3], %s532_s25 }
  0x16   : > { %s129_s27 = sadd.s32 (%p42_p3), %s587_s26, %s534_s24 }
  0x17   : > { %s536_s28 = sshll.u32 (%p42_p3), %s129_s27, 2 }
  0x18   : > { %s131_s3 = scalar_lea.vmem (%p42_p3), %s863_s0, %s536_s28 }
  0x19   : > { %v161_v0 = vld [vmem:[%s131_s3] sm:$0xff]  ;;  %v163_v1 = vld [vmem:[%s131_s3 + $0x18] sm:$0xff] }
  0x1a   : > { %162 = vst [vmem:[%s125_s4] sm:$0xff] %v161_v0  ;;  %164 = vst [vmem:[%s125_s4 + $0x8] sm:$0xff] %v163_v1 }
  0x1b PF: > { %p537_p7 = scmp.ge.s32.totalorder %s722_s15, 1  ;;  %p178_p8 = scmp.lt.s32.totalorder %s722_s15, 7 }
  0x1d   : > { %p179_p9 = pnand %p537_p7, %p178_p8 }
  0x1e   : > { %s185_s5 = sand.u32 (!%p179_p9), 1, %s698_s9   ;;  %s539_s6 = sshll.u32 (!%p179_p9), %s706_s11, 5 }
  0x1f   : > { %182 = sbr.rel (%p179_p9) target bundleno = 470 (0x1d6), region = 62  ;;  %s804_s7 = sshll.u32 (!%p179_p9), %s185_s5, 4 }
  0x20   : > { %p214_p10 = scmp.lt.s32.totalorder (!%p179_p9), %s539_s6, 95  ;;  %s541_s8 = sshll.u32 (!%p179_p9), %s710_s12, 1 }
  0x21   : > { %p220_p11 = scmp.lt.s32.totalorder (!%p179_p9), %s541_s8, 3  ;;  %s187_s26 = scalar_lea.vmem (!%p179_p9), [#allocation3], %s804_s7 }
  0x22   : > { %p543_p12 = scmp.ne.s32.totalorder (!%p179_p9), %s706_s11, 0 }
  0x26   : > { %s879_s6 = smov (!%p214_p10, %s539_s6), 95  ;;  %s881_s8 = smov (!%p220_p11, %s541_s8), 3 }
  0x27   : > { %s540_s18 = sshll.u32 %s879_s6, 2  ;;  %s542_s23 = sshll.u32 %s881_s8, 3  ;;  %v724_v2 = vmov (!%p543_p12), 0.0  }
  0x28   : > { %s810_s21 = scalar_lea.vmem %s864_s1, %s540_s18  ;;  %s815_s9 = scalar_lea.vmem %s865_s2, %s542_s23  ;;  %230 = vst [vmem:[#allocation2] sm:$0xff] (!%p543_p12), %v724_v2  ;;  %231 = vst [vmem:[#allocation2 + $0x8] sm:$0xff] (!%p543_p12), %v724_v2 }
  0x29   : > { %229 = sbr.rel (%p543_p12) target bundleno = 48 (0x30), region = 70 }
  0x30 PF: > { %v645_v3 = vld [vmem:[%s810_s21 + $0x40] sm:$0xff]   ;;  %v647_v5 = vld [vmem:[%s810_s21 + $0x48] sm:$0xff]   ;;  %v649_v7 = vld [vmem:[%s810_s21 + $0x50] sm:$0xff]   ;;  %p562_p13 = scmp.ne.s32.totalorder %s706_s11, 2 }
  0x31   : > { %v646_v4 = vld [vmem:[%s810_s21] sm:$0xff]   ;;  %565 = vmatprep.subr.bf16.mxu0 %v645_v3  ;;  %v648_v6 = vld [vmem:[%s810_s21 + $0x8] sm:$0xff]   ;;  %v650_v8 = vld [vmem:[%s810_s21 + $0x10] sm:$0xff]  }
  0x32   : > { %566 = vmatpush3.bf16.msra.mxu0 %v646_v4  ;;  %v651_v9 = vld [vmem:[%s810_s21 + $0x58] sm:$0xff]   ;;  %v653_v11 = vld [vmem:[%s810_s21 + $0x60] sm:$0xff]   ;;  %v655_v13 = vld [vmem:[%s810_s21 + $0x68] sm:$0xff]  }
  0x33   : > { %567 = vmatprep.subr.bf16.mxu0 %v647_v5  ;;  %v652_v10 = vld [vmem:[%s810_s21 + $0x18] sm:$0xff]   ;;  %v654_v12 = vld [vmem:[%s810_s21 + $0x20] sm:$0xff]   ;;  %v656_v15 = vld [vmem:[%s810_s21 + $0x28] sm:$0xff]  }
  0x34   : > { %v663_v14 = vld [vmem:[%s187_s26 + $0x4] ss:$8 sps:$4 sm:$0xff]   ;;  %v661_v20 = vld [vmem:[%s187_s26] ss:$8 sps:$4 sm:$0xff]  }
  0x35   : > { %406 = vmatprep.mubr.bf16.mxu0 %v663_v14  ;;  %v657_v16 = vld [vmem:[%s810_s21 + $0x70] sm:$0xff]   ;;  %v659_v18 = vld [vmem:[%s810_s21 + $0x78] sm:$0xff]   ;;  %v232_v22 = vld [vmem:[#allocation2] sm:$0xff] }
  0x36   : > { %568 = vmatpush3.bf16.msra.mxu0 %v648_v6  ;;  %v658_v17 = vld [vmem:[%s810_s21 + $0x30] sm:$0xff]   ;;  %v660_v19 = vld [vmem:[%s810_s21 + $0x38] sm:$0xff]   ;;  %v233_v26 = vld [vmem:[#allocation2 + $0x8] sm:$0xff] }
  0x37   : > { %569 = vmatprep.subr.bf16.mxu0 %v649_v7 }
  0x3a   : > { %570 = vmatpush3.bf16.msra.mxu0 %v650_v8 }
  0x3b   : > { %571 = vmatprep.subr.bf16.mxu0 %v651_v9 }
  0x3e   : > { %572 = vmatpush3.bf16.msra.mxu0 %v652_v10 }
  0x3f   : > { %573 = vmatprep.subr.bf16.mxu0 %v653_v11 }
  0x42   : > { %574 = vmatpush3.bf16.msra.mxu0 %v654_v12 }
  0x43   : > { %575 = vmatprep.subr.bf16.mxu0 %v655_v13 }
  0x46   : > { %576 = vmatpush3.bf16.msra.mxu0 %v656_v15 }
  0x47   : > { %577 = vmatprep.subr.bf16.mxu0 %v657_v16 }
  0x4a   : > { %578 = vmatpush3.bf16.msra.mxu0 %v658_v17 }
  0x4b   : > { %579 = vmatprep.subr.bf16.mxu0 %v659_v18 }
  0x4e   : > { %580 = vmatpush3.bf16.msra.mxu0 %v660_v19 }
  0x51   : > { %407 = vmatmul.mubr.bf16.vlgmr.msra.gmra.mrb[0].mxu0 %v661_v20 }
 0x124   : > { %v581_v21 = vpop.f32.mrb[0].mxu0 }
 0x125   : > { %v582_v23 = vpop.f32.mrb[1].mxu0 }
 0x126   : > { %v583_v24 = vadd.f32 %v582_v23, %v581_v21  ;;  %v584_v25 = vpop.f32.mrb[2].mxu0  ;;  %422 = sbr.rel (%p562_p13) target bundleno = 470 (0x1d6), region = 74 }
 0x127   : > { %v585_v27 = vpop.f32.mrb[3].mxu0 }
 0x128   : > { %v415_v28 = vadd.f32 %v583_v24, %v232_v22  ;;  %v586_v29 = vadd.f32 %v585_v27, %v584_v25 }
 0x12a   : > { %417 = vst [vmem:[#allocation2] sm:$0xff] %v415_v28  ;;  %v416_v30 = vadd.f32 %v586_v29, %v233_v26 }
 0x12c   : > { %418 = vst [vmem:[#allocation2 + $0x8] sm:$0xff] %v416_v30 }
 0x131   : > { %v423_v31 = vld [vmem:[#allocation2] sm:$0xff] }
 0x132   : > { %v425_v33 = vmul.f32 %v423_v31, %v423_v31 }
 0x133   : > { %v424_v32 = vld [vmem:[#allocation2 + $0x8] sm:$0xff] }
 0x134   : > { %427 = vadd.xlane.f32.xlu0 %v425_v33  ;;  %v426_v34 = vmul.f32 %v424_v32, %v424_v32 }
 0x138   : > { %429 = vadd.xlane.f32.xlu0 %v426_v34 }
 0x1c1   : > { %v428_v35 = vpop.xlane.xlu0 %427 }
 0x1c2   : > { %v431_v36 = vmax.f32 %v428_v35, 1e-12 }
 0x1c4   : > { %664 = vrsqrt.f32 %v431_v36 }
 0x1c5   : > { %v430_v37 = vpop.xlane.xlu0 %429 }
 0x1c6   : > { %v432_v38 = vmax.f32 %v430_v37, 1e-12 }
 0x1c8   : > { %666 = vrsqrt.f32 %v432_v38 }
 0x1ce   : > { %v665_v39 = vpop.eup %664 }
 0x1cf   : > { %v435_v40 = vmul.f32 %v665_v39, %v423_v31 }
 0x1d1   : > { %437 = vst [vmem:[%s815_s9] sm:$0xff] %v435_v40 }
 0x1d2   : > { %v667_v41 = vpop.eup %666 }
 0x1d3   : > { %v436_v42 = vmul.f32 %v667_v41, %v424_v32 }
 0x1d5   : > { %438 = vst [vmem:[%s815_s9 + $0x8] sm:$0xff] %v436_v42 }
 0x1d6 PF: > { %s12_s15 = sadd.s32 1, %s722_s15   ;;  %s866_s9 = smov %s702_s10 }
 0x1d7   : > { %p9_p0 = scmp.ge.s32.totalorder %s12_s15, 8   ;;  %s867_s10 = smov %s791_s22 }
 0x1d8   : > { %s868_s11 = smov %s714_s13  ;;  %s869_s12 = smov %s718_s14 }
 0x1d9   : > { %s870_s13 = smov %s873_s16  ;;  %s871_s14 = smov %s877_s17 }
 0x1da   :  { %11 = sbr.rel (!%p9_p0) target bundleno = 4 (0x4), region = 112 }

</bundles_post_ra>
